<compile_context>
chip_gen: v7x
topology: tpu7x:2x2x1
jax: 0.10.0
libtpu: 0.0.40
codegen_flags: <defaults>
</compile_context>

<pallas_src>
import functools
import math

import jax
import jax.numpy as jnp
from jax.experimental import pallas as pl
from jax.experimental.pallas import tpu as pltpu

F32 = jnp.float32


def _charbonnier_kernel(x_ref, y_ref, o_ref, *, eps):
    """Per-tile partial sum of sqrt((x - y)^2 + eps), folded to an (8, lane) block."""
    tile_rows, lane = x_ref.shape
    # 16-row groups keep loads aligned to bf16 (16, 128) sublane packing;
    # fall back to 8 only when the whole tile is 8 rows (tile == full array).
    group = 16 if tile_rows % 16 == 0 else 8
    n_groups = tile_rows // group
    n_acc = min(4, n_groups)  # independent accumulators -> no long latency chain
    accs = [jnp.zeros((8, lane), jnp.float32) for _ in range(n_acc)]
    for g in range(n_groups):
        lo, hi = g * group, (g + 1) * group
        xg = x_ref[lo:hi, :].astype(jnp.float32)  # in-register upcast (bf16/f16 inputs)
        yg = y_ref[lo:hi, :].astype(jnp.float32)
        d = xg - yg
        t = jnp.sqrt(d * d + eps)                 # sqrt -> EUP slot (free under DMA)
        if group == 16:
            t = t[0:8, :] + t[8:16, :]            # fold to one (8, lane) slab (VPU)
        accs[g % n_acc] = accs[g % n_acc] + t
    total = accs[0]
    for a in accs[1:]:
        total = total + a
    o_ref[...] = total


def charbonnier_loss(x, y, eps=1e-6):
    """Charbonnier loss: mean(sqrt((x - y)^2 + eps)), matching the PyTorch module."""
    assert x.shape == y.shape, (x.shape, y.shape)
    n = math.prod(x.shape)

    # Keep the native dtype; the kernel upcasts in-register.
    xf = jnp.ravel(x)
    yf = jnp.ravel(y)

    lane = 512 if n >= 8 * 512 else 128
    rows = n // lane
    rows8 = (rows // 8) * 8

    if rows8 == 0:
        # Tiny input (n < 1024): pad to one minimal (8, 128) block.  Both inputs
        # are zero-padded, so each padded element contributes exactly sqrt(eps);
        # subtract that instead of masking in-kernel.  Pad cost is negligible.
        tile_rows, grid = 8, 1
        pad = tile_rows * lane - n
        xm = jnp.pad(xf, (0, pad)).reshape(tile_rows, lane)
        ym = jnp.pad(yf, (0, pad)).reshape(tile_rows, lane)
        tail = -pad * math.sqrt(eps)
    else:
        cap = 1024 if lane == 512 else 512        # <= 2 MiB f32 per input block
        grid = pl.cdiv(rows8, cap)
        if grid > 1 and grid % 2 == 1:
            grid += 1                             # even grid -> balanced across v7x's 2 TCs
        per = rows8 // grid
        gran = 16 if per >= 16 else 8             # multiple of 16 for bf16 sublane packing
        tile_rows = (per // gran) * gran
        n_main = grid * tile_rows * lane
        # Aligned prefix handled by the kernel; no jnp.pad of the full input.
        # (When n_main == n — the common case — this is a pure reshape view.)
        xm = (xf if n_main == n else xf[:n_main]).reshape(grid * tile_rows, lane)
        ym = (yf if n_main == n else yf[:n_main]).reshape(grid * tile_rows, lane)
        if n_main < n:
            # Small unaligned remainder: plain JAX (tiny fraction of the input).
            xt = xf[n_main:].astype(F32)
            yt = yf[n_main:].astype(F32)
            dt = xt - yt
            tail = jnp.sum(jnp.sqrt(dt * dt + eps))
        else:
            tail = 0.0

    partial = pl.pallas_call(
        functools.partial(_charbonnier_kernel, eps=float(eps)),
        out_shape=jax.ShapeDtypeStruct((grid * 8, lane), F32),
        grid=(grid,),
        in_specs=[
            pl.BlockSpec((tile_rows, lane), lambda i: (i, 0)),
            pl.BlockSpec((tile_rows, lane), lambda i: (i, 0)),
        ],
        out_specs=pl.BlockSpec((8, lane), lambda i: (i, 0)),
        compiler_params=pltpu.CompilerParams(
            dimension_semantics=("parallel",),    # independent tiles -> megacore OK
            vmem_limit_bytes=32 * 1024 * 1024,    # blocks use <= ~8 MiB double-buffered
        ),
    )(xm, ym)

    # Final reduction over the tiny (grid*8, lane) partial slab in JAX.
    return (jnp.sum(partial) + tail) / n


def _reference_loss(x, y, eps=1e-6):
    d = x - y
    return jnp.mean(jnp.sqrt(d * d + eps))


if __name__ == "__main__":
    key = jax.random.PRNGKey(0)
    loss_fn = jax.jit(charbonnier_loss)

    # Shapes: the module's intended small usage, a multi-group tile (lane=512),
    # an even multi-step grid, a ragged tiny shape (padded block + sqrt(eps)
    # correction), and a bf16 input streamed in native precision.
    cases = [
        ((2, 4, 16, 16), jnp.float32),
        ((2, 3, 64, 64), jnp.float32),
        ((4, 3, 256, 256), jnp.float32),
        ((1, 3, 17, 19), jnp.float32),
        ((2, 4, 16, 16), jnp.bfloat16),
    ]
    for shp, dt in cases:
        key, kx, ky = jax.random.split(key, 3)
        x = jax.random.normal(kx, shp, dtype=jnp.float32).astype(dt)
        y = jax.random.normal(ky, shp, dtype=jnp.float32).astype(dt)

        got = jax.block_until_ready(loss_fn(x, y))
        want = _reference_loss(x.astype(jnp.float32), y.astype(jnp.float32))

        assert got.shape == (), got.shape
        assert bool(jnp.isfinite(got))
        assert bool(jnp.allclose(got, want, rtol=2e-3, atol=1e-6)), (
            shp, str(dt), float(got), float(want))

    print("KERNEL_OK")
</pallas_src>

<mosaic_0001>
module attributes {stable_mosaic.version = 11 : i64} {
  func.func @_charbonnier_kernel(%arg0: i32, %arg1: memref<16x128xf32, #tpu.memory_space<vmem>>, %arg2: memref<16x128xf32, #tpu.memory_space<vmem>>, %arg3: memref<8x128xf32, #tpu.memory_space<vmem>>) attributes {dimension_semantics = [#tpu.dimension_semantics<parallel>], iteration_bounds = array<i64: 1>, scalar_prefetch = 0 : i64, scratch_operands = 0 : i64, tpu.core_type = #tpu.core_type<tc>, window_params = [{transform_indices = @transform_0, window_bounds = array<i64: 16, 128>}, {transform_indices = @transform_1, window_bounds = array<i64: 16, 128>}, {transform_indices = @transform_2, window_bounds = array<i64: 8, 128>}]} {
    %cst = arith.constant 0.000000e+00 : f32
    %0 = vector.broadcast %cst : f32 to vector<8x128xf32>
    %c0 = arith.constant 0 : index
    %c0_0 = arith.constant 0 : index
    %1 = vector.load %arg1[%c0, %c0_0] : memref<16x128xf32, #tpu.memory_space<vmem>>, vector<16x128xf32>
    %c0_1 = arith.constant 0 : index
    %c0_2 = arith.constant 0 : index
    %2 = vector.load %arg2[%c0_1, %c0_2] : memref<16x128xf32, #tpu.memory_space<vmem>>, vector<16x128xf32>
    %3 = arith.subf %1, %2 : vector<16x128xf32>
    %4 = arith.mulf %3, %3 : vector<16x128xf32>
    %cst_3 = arith.constant 9.99999997E-7 : f32
    %5 = vector.broadcast %cst_3 : f32 to vector<16x128xf32>
    %6 = arith.addf %4, %5 : vector<16x128xf32>
    %7 = math.sqrt %6 : vector<16x128xf32>
    %8 = vector.extract_strided_slice %7 {offsets = [0, 0], sizes = [8, 128], strides = [1, 1]} : vector<16x128xf32> to vector<8x128xf32>
    %9 = vector.extract_strided_slice %7 {offsets = [8, 0], sizes = [8, 128], strides = [1, 1]} : vector<16x128xf32> to vector<8x128xf32>
    %10 = arith.addf %8, %9 : vector<8x128xf32>
    %11 = arith.addf %0, %10 : vector<8x128xf32>
    %c0_4 = arith.constant 0 : index
    %c0_5 = arith.constant 0 : index
    %12 = vector.load %arg3[%c0_4, %c0_5] : memref<8x128xf32, #tpu.memory_space<vmem>>, vector<8x128xf32>
    tpu.vector_store %arg3[%c0_4, %c0_5], %11 {strides = array<i32>} : memref<8x128xf32, #tpu.memory_space<vmem>>, vector<8x128xf32>,
    return
  }
  func.func @transform_0(%arg0: i32) -> (i32, i32) {
    %c0_i32 = arith.constant 0 : i32
    %c0_i32_0 = arith.constant 0 : i32
    return %arg0, %c0_i32 : i32, i32
  }
  func.func @transform_1(%arg0: i32) -> (i32, i32) {
    %c0_i32 = arith.constant 0 : i32
    %c0_i32_0 = arith.constant 0 : i32
    return %arg0, %c0_i32 : i32, i32
  }
  func.func @transform_2(%arg0: i32) -> (i32, i32) {
    %c0_i32 = arith.constant 0 : i32
    %c0_i32_0 = arith.constant 0 : i32
    return %arg0, %c0_i32 : i32, i32
  }
}

</mosaic_0001>

<bundles_post_ra>
// kernel: charbonnier_loss.1
= control target key start
LH: loop header
LB: loop body
LE: loop exit
PB: predicated region body
PF: predicated region fallthrough
CT: control target
= control target key end

     0   :  { %s76_s0 = inlined_call_operand.vmem [shape: f32[16,128], index: 0, kind: input, shape index: {}]   ;;  %s77_s1 = inlined_call_operand.vmem [shape: f32[16,128], index: 1, kind: input, shape index: {}]   ;;  %s78_s2 = inlined_call_operand.vmem [shape: f32[8,128], index: 2, kind: output, shape index: {}]  }
   0x1   :  { %v11_v0 = vld [vmem:[%s76_s0] sm:$0xff]  ;;  %v12_v1 = vld [vmem:[%s76_s0 + $0x8] sm:$0xff] }
   0x2   :  { %v13_v2 = vld [vmem:[%s77_s1] sm:$0xff]  ;;  %v14_v3 = vld [vmem:[%s77_s1 + $0x8] sm:$0xff] }
   0x3   :  { %v15_v4 = vsub.f32 %v11_v0, %v13_v2  ;;  %v16_v5 = vsub.f32 %v12_v1, %v14_v3 }
   0x5   :  { %v17_v6 = vmul.f32 %v15_v4, %v15_v4  ;;  %v18_v7 = vmul.f32 %v16_v5, %v16_v5 }
   0x7   :  { %v19_v8 = vadd.f32 1e-06, %v17_v6  ;;  %v20_v9 = vadd.f32 1e-06, %v18_v7 }
   0x9   :  { %42 = vrsqrt.f32 %v19_v8  ;;  %vm23_vm0 = vcmp.eq.f32.partialorder %v19_v8, inf  ;;  %v26_v11 = vand.u32 2147483648, %v19_v8  ;;  %vm25_vm1 = vcmp.eq.f32.partialorder %v19_v8, 0.0 }
   0xa   :  { %44 = vrsqrt.f32 %v20_v9  ;;  %vm30_vm2 = vcmp.eq.f32.partialorder %v20_v9, inf  ;;  %v33_v14 = vand.u32 2147483648, %v20_v9  ;;  %vm32_vm3 = vcmp.eq.f32.partialorder %v20_v9, 0.0 }
  0x13   :  { %v43_v10 = vpop.eup %42 }
  0x14   :  { %v45_v12 = vpop.eup %44  ;;  %v22_v13 = vmul.f32 %v43_v10, %v19_v8 }
  0x15   :  { %v29_v15 = vmul.f32 %v45_v12, %v20_v9 }
  0x16   :  { %v24_v16 = vsel %vm23_vm0, %v19_v8, %v22_v13 }
  0x17   :  { %v27_v17 = vsel %vm25_vm1, %v26_v11, %v24_v16  ;;  %v31_v18 = vsel %vm30_vm2, %v20_v9, %v29_v15 }
  0x18   :  { %v34_v19 = vsel %vm32_vm3, %v33_v14, %v31_v18 }
  0x19   :  { %v35_v20 = vadd.f32 %v34_v19, %v27_v17 }
  0x1b   :  { %37 = vst [vmem:[%s78_s2] sm:$0xff] %v35_v20 }

</bundles_post_ra>
